<compile_context>
chip_gen: v7x
topology: tpu7x:2x2x1
jax: 0.10.0
libtpu: 0.0.40
codegen_flags: <defaults>
</compile_context>

<pallas_src>
import functools

import jax
import jax.numpy as jnp
from jax.experimental import pallas as pl
from jax.experimental.pallas import tpu as pltpu


def _round_up(x, n):
    return (x + n - 1) // n * n


def mlp_kernel(x_ref, wgu_ref, wd_ref, o_ref, acc_ref):
    j = pl.program_id(1)

    @pl.when(j == 0)
    def _():
        acc_ref[...] = jnp.zeros_like(acc_ref)

    x = x_ref[...]                                                   # [TT, hd] bf16
    gu = jnp.dot(x, wgu_ref[...],
                 preferred_element_type=jnp.float32)                 # [TT, 2*tm] f32
    tm = gu.shape[1] // 2
    g = gu[:, :tm]                                                   # lane-aligned vreg split
    u = gu[:, tm:]
    h = (g * jax.lax.logistic(g)) * u                                # SiLU(g) * u (EUP + VPU)
    acc_ref[...] += jnp.dot(h.astype(wd_ref.dtype), wd_ref[...],
                            preferred_element_type=jnp.float32)      # [TT, hd]

    @pl.when(j == pl.num_programs(1) - 1)
    def _():
        o_ref[...] = acc_ref[...].astype(o_ref.dtype)


def fuse_gate_up(wg, wu, tm):
    """Interleave gate/up weights tile-wise: block j of the result is
    [wg[:, j*tm:(j+1)*tm] | wu[:, j*tm:(j+1)*tm]]  -> shape [hd, 2*m].
    One-time weight-layout preprocessing (outside the hot path)."""
    hd, m = wg.shape
    assert m % tm == 0
    wg_r = wg.reshape(hd, m // tm, tm)
    wu_r = wu.reshape(hd, m // tm, tm)
    return jnp.concatenate([wg_r, wu_r], axis=2).reshape(hd, 2 * m)


@functools.partial(jax.jit, static_argnames=("tt", "tm"))
def mlp_forward(x, wgu, wd, *, tt=256, tm=512):
    """x: [T, hd] bf16; wgu: [hd, 2*m] tile-fused (see fuse_gate_up with the
    same tm); wd: [m, hd] bf16.  Returns [T, hd] in x.dtype."""
    T, hd = x.shape
    m = wgu.shape[1] // 2
    assert wd.shape == (m, hd)
    assert m % tm == 0, "m must be a multiple of tm"
    assert (2 * tm) % 128 == 0 and tm % 8 == 0
    assert hd % 128 == 0, "hd should be a multiple of 128"

    # Token tiling: pad T up so a whole number of token tiles covers it.
    tt_eff = min(tt, _round_up(T, 8))
    Tp = _round_up(T, tt_eff)
    if Tp != T:
        x = jnp.pad(x, ((0, Tp - T), (0, 0)))

    grid = (Tp // tt_eff, m // tm)

    # VMEM budget: double-buffered inputs + f32 accumulator + output buffers.
    bpe = x.dtype.itemsize
    in_bytes = 2 * ((tt_eff * hd) + (hd * 2 * tm) + (tm * hd)) * bpe
    acc_bytes = tt_eff * hd * 4
    out_bytes = 2 * tt_eff * hd * bpe
    vmem_limit = min(64 << 20,  # clamp to v7x per-TC VMEM so tiling is portable
                     max(32 << 20, int(1.5 * (in_bytes + acc_bytes + out_bytes))))

    # Advisory cost for the XLA scheduler.
    flops = 6 * Tp * hd * m                     # gate + up + down matmuls
    transcendentals = Tp * m                    # sigmoid in SiLU
    bytes_accessed = grid[0] * (3 * hd * m) * bpe + 2 * Tp * hd * bpe

    out = pl.pallas_call(
        mlp_kernel,
        out_shape=jax.ShapeDtypeStruct((Tp, hd), x.dtype),
        grid_spec=pltpu.PrefetchScalarGridSpec(
            num_scalar_prefetch=0,
            grid=grid,
            in_specs=[
                pl.BlockSpec((tt_eff, hd), lambda i, j: (i, 0)),    # x tile (resident over j)
                pl.BlockSpec((hd, 2 * tm), lambda i, j: (0, j)),    # [Wg_j|Wu_j]
                pl.BlockSpec((tm, hd), lambda i, j: (j, 0)),        # Wd tile
            ],
            out_specs=pl.BlockSpec((tt_eff, hd), lambda i, j: (i, 0)),
            scratch_shapes=[pltpu.VMEM((tt_eff, hd), jnp.float32)],
        ),
        compiler_params=pltpu.CompilerParams(
            dimension_semantics=("parallel", "arbitrary"),
            vmem_limit_bytes=vmem_limit,
        ),
        cost_estimate=pl.CostEstimate(
            flops=flops,
            transcendentals=transcendentals,
            bytes_accessed=bytes_accessed,
        ),
    )(x, wgu, wd)

    if Tp != T:
        out = out[:T]
    return out


def mlp_reference(x, wg, wu, wd):
    xf = x.astype(jnp.float32)
    g = xf @ wg.astype(jnp.float32)
    u = xf @ wu.astype(jnp.float32)
    h = jax.nn.silu(g) * u
    return (h @ wd.astype(jnp.float32)).astype(x.dtype)


if __name__ == "__main__":
    # Small shapes consistent with the module (hd -> m -> hd), scaled down.
    tokens, hd, m = 8, 256, 512      # e.g. batch=2 * seq=4 tokens
    tm, tt = 256, 256                # 2 reduction steps over m; 1 token tile
    dtype = jnp.bfloat16             # stand-in for torch.float16 compute dtype

    key = jax.random.PRNGKey(0)
    kx, kg, ku, kd = jax.random.split(key, 4)
    x = (jax.random.normal(kx, (tokens, hd), jnp.float32) * 0.5).astype(dtype)
    # nn.Linear weights are [out, in]; store transposed [in, out] for the kernel.
    wg = (jax.random.normal(kg, (hd, m), jnp.float32) * (hd ** -0.5)).astype(dtype)
    wu = (jax.random.normal(ku, (hd, m), jnp.float32) * (hd ** -0.5)).astype(dtype)
    wd = (jax.random.normal(kd, (m, hd), jnp.float32) * (m ** -0.5)).astype(dtype)

    wgu = fuse_gate_up(wg, wu, tm)   # one-time weight layout prep

    out = mlp_forward(x, wgu, wd, tt=tt, tm=tm)
    out = jax.block_until_ready(out)

    ref = mlp_reference(x, wg, wu, wd)
    err = jnp.max(jnp.abs(out.astype(jnp.float32) - ref.astype(jnp.float32)))
    assert out.shape == (tokens, hd) and out.dtype == dtype
    assert float(err) < 5e-2, f"max abs err {float(err)}"

    # Exercise the token-padding path (T not a multiple of the token tile).
    x2 = (jax.random.normal(kx, (12, hd), jnp.float32) * 0.5).astype(dtype)
    out2 = jax.block_until_ready(mlp_forward(x2, wgu, wd, tt=tt, tm=tm))
    ref2 = mlp_reference(x2, wg, wu, wd)
    err2 = jnp.max(jnp.abs(out2.astype(jnp.float32) - ref2.astype(jnp.float32)))
    assert out2.shape == (12, hd) and float(err2) < 5e-2, f"max abs err {float(err2)}"

    print("KERNEL_OK")
</pallas_src>

<mosaic_0001>
module attributes {stable_mosaic.version = 11 : i64} {
  func.func @mlp_kernel(%arg0: i32, %arg1: i32, %arg2: memref<8x256xbf16, #tpu.memory_space<vmem>>, %arg3: memref<256x512xbf16, #tpu.memory_space<vmem>>, %arg4: memref<256x256xbf16, #tpu.memory_space<vmem>>, %arg5: memref<8x256xbf16, #tpu.memory_space<vmem>>, %arg6: memref<8x256xf32, #tpu.memory_space<vmem>>) attributes {dimension_semantics = [#tpu.dimension_semantics<parallel>, #tpu.dimension_semantics<arbitrary>], iteration_bounds = array<i64: 1, 2>, scalar_prefetch = 0 : i64, scratch_operands = 1 : i64, tpu.core_type = #tpu.core_type<tc>, window_params = [{transform_indices = @transform_0, window_bounds = array<i64: 8, 256>}, {transform_indices = @transform_1, window_bounds = array<i64: 256, 512>}, {transform_indices = @transform_2, window_bounds = array<i64: 256, 256>}, {transform_indices = @transform_3, window_bounds = array<i64: 8, 256>}]} {
    %c0_i32 = arith.constant 0 : i32
    %0 = arith.cmpi eq, %arg1, %c0_i32 : i32
    %1 = arith.extui %0 : i1 to i32
    %c0_i32_0 = arith.constant 0 : i32
    %2 = arith.cmpi ne, %1, %c0_i32_0 : i32
    scf.if %2 {
      %cst_13 = arith.constant 0.000000e+00 : f32
      %24 = vector.broadcast %cst_13 : f32 to vector<8x256xf32>
      %c0_14 = arith.constant 0 : index
      %c0_15 = arith.constant 0 : index
      %25 = vector.load %arg6[%c0_14, %c0_15] : memref<8x256xf32, #tpu.memory_space<vmem>>, vector<8x256xf32>
      tpu.vector_store %arg6[%c0_14, %c0_15], %24 {strides = array<i32>} : memref<8x256xf32, #tpu.memory_space<vmem>>, vector<8x256xf32>,
    } else {
    }
    %c0 = arith.constant 0 : index
    %c0_1 = arith.constant 0 : index
    %3 = vector.load %arg2[%c0, %c0_1] : memref<8x256xbf16, #tpu.memory_space<vmem>>, vector<8x256xbf16>
    %c0_2 = arith.constant 0 : index
    %c0_3 = arith.constant 0 : index
    %4 = vector.load %arg3[%c0_2, %c0_3] : memref<256x512xbf16, #tpu.memory_space<vmem>>, vector<256x512xbf16>
    %cst = arith.constant dense<0.000000e+00> : vector<8x512xf32>
    %5 = tpu.matmul %3, %4, %cst {dimension_numbers = #tpu.dot_dimension_numbers<[1], [0], [0], [1], [0, 0, 1, 1], [], []>} : vector<8x256xbf16>, vector<256x512xbf16>, vector<8x512xf32> -> vector<8x512xf32>
    %6 = vector.extract_strided_slice %5 {offsets = [0, 0], sizes = [8, 256], strides = [1, 1]} : vector<8x512xf32> to vector<8x256xf32>
    %7 = vector.extract_strided_slice %5 {offsets = [0, 256], sizes = [8, 256], strides = [1, 1]} : vector<8x512xf32> to vector<8x256xf32>
    %8 = arith.negf %6 : vector<8x256xf32>
    %9 = math.exp %8 : vector<8x256xf32>
    %cst_4 = arith.constant 1.000000e+00 : f32
    %10 = vector.broadcast %cst_4 : f32 to vector<8x256xf32>
    %11 = arith.addf %10, %9 : vector<8x256xf32>
    %12 = arith.divf %10, %11 : vector<8x256xf32>
    %13 = arith.mulf %6, %12 : vector<8x256xf32>
    %14 = arith.mulf %13, %7 : vector<8x256xf32>
    %c0_5 = arith.constant 0 : index
    %c0_6 = arith.constant 0 : index
    %15 = vector.load %arg6[%c0_5, %c0_6] : memref<8x256xf32, #tpu.memory_space<vmem>>, vector<8x256xf32>
    %16 = arith.truncf %14 : vector<8x256xf32> to vector<8x256xbf16>
    %c0_7 = arith.constant 0 : index
    %c0_8 = arith.constant 0 : index
    %17 = vector.load %arg4[%c0_7, %c0_8] : memref<256x256xbf16, #tpu.memory_space<vmem>>, vector<256x256xbf16>
    %cst_9 = arith.constant dense<0.000000e+00> : vector<8x256xf32>
    %18 = tpu.matmul %16, %17, %cst_9 {dimension_numbers = #tpu.dot_dimension_numbers<[1], [0], [0], [1], [0, 0, 1, 1], [], []>} : vector<8x256xbf16>, vector<256x256xbf16>, vector<8x256xf32> -> vector<8x256xf32>
    %19 = arith.addf %15, %18 : vector<8x256xf32>
    %c0_10 = arith.constant 0 : index
    %c0_11 = arith.constant 0 : index
    %20 = vector.load %arg6[%c0_10, %c0_11] : memref<8x256xf32, #tpu.memory_space<vmem>>, vector<8x256xf32>
    tpu.vector_store %arg6[%c0_10, %c0_11], %19 {strides = array<i32>} : memref<8x256xf32, #tpu.memory_space<vmem>>, vector<8x256xf32>,
    %c1_i32 = arith.constant 1 : i32
    %21 = arith.cmpi eq, %arg1, %c1_i32 : i32
    %22 = arith.extui %21 : i1 to i32
    %c0_i32_12 = arith.constant 0 : i32
    %23 = arith.cmpi ne, %22, %c0_i32_12 : i32
    scf.if %23 {
      %c0_13 = arith.constant 0 : index
      %c0_14 = arith.constant 0 : index
      %24 = vector.load %arg6[%c0_13, %c0_14] : memref<8x256xf32, #tpu.memory_space<vmem>>, vector<8x256xf32>
      %25 = arith.truncf %24 : vector<8x256xf32> to vector<8x256xbf16>
      %c0_15 = arith.constant 0 : index
      %c0_16 = arith.constant 0 : index
      %26 = vector.load %arg5[%c0_15, %c0_16] : memref<8x256xbf16, #tpu.memory_space<vmem>>, vector<8x256xbf16>
      tpu.vector_store %arg5[%c0_15, %c0_16], %25 {strides = array<i32>} : memref<8x256xbf16, #tpu.memory_space<vmem>>, vector<8x256xbf16>,
    } else {
    }
    return
  }
  func.func @transform_0(%arg0: i32, %arg1: i32) -> (i32, i32) {
    %c0_i32 = arith.constant 0 : i32
    %c0_i32_0 = arith.constant 0 : i32
    return %arg0, %c0_i32 : i32, i32
  }
  func.func @transform_1(%arg0: i32, %arg1: i32) -> (i32, i32) {
    %c0_i32 = arith.constant 0 : i32
    %c0_i32_0 = arith.constant 0 : i32
    return %c0_i32, %arg1 : i32, i32
  }
  func.func @transform_2(%arg0: i32, %arg1: i32) -> (i32, i32) {
    %c0_i32 = arith.constant 0 : i32
    %c0_i32_0 = arith.constant 0 : i32
    return %arg1, %c0_i32 : i32, i32
  }
  func.func @transform_3(%arg0: i32, %arg1: i32) -> (i32, i32) {
    %c0_i32 = arith.constant 0 : i32
    %c0_i32_0 = arith.constant 0 : i32
    return %arg0, %c0_i32 : i32, i32
  }
}

</mosaic_0001>

<bundles_post_ra>
// kernel: mlp_forward.1
= control target key start
LH: loop header
LB: loop body
LE: loop exit
PB: predicated region body
PF: predicated region fallthrough
CT: control target
= control target key end

     0   :  { %8 = vsyncpa [#allocation4], 0  ;;  %s1998_s0 = inlined_call_operand.hbm [shape: bf16[8,256], index: 0, kind: input, shape index: {}]   ;;  %s1999_s1 = inlined_call_operand.hbm [shape: bf16[256,1024], index: 1, kind: input, shape index: {}]   ;;  %s2000_s2 = inlined_call_operand.hbm [shape: bf16[512,256], index: 2, kind: input, shape index: {}]   ;;  %s2001_s3 = inlined_call_operand.hbm [shape: bf16[8,256], index: 3, kind: output, shape index: {}]  }
   0x1   :  { %9 = vsyncpa [#allocation7], 0 }
   0x2   :  { %11 = vsyncpa [#allocation7 + $0x1], 0 }
   0x3   :  { %12 = vsyncpa [#allocation5], 0  ;;  %s1680_s12 = smov 0   ;;  %s1682_s13 = smov 0  }
   0x4   :  { %s1684_s14 = smov 0   ;;  %s1686_s15 = smov 0  }
   0x5   :  { %s1688_s16 = smov 0   ;;  %s1690_s17 = smov 0  }
   0x6 LB: > { %s27_s18 = sadd.s32 1, %s1644_s16  ;;  %s63_s19 = sadd.s32 1, %s1636_s14  ;;  %s1648_s17 = sphi %s1690_s17, %s18_s17   ;;  %s1644_s16 = sphi %s1688_s16, %s2023_s16   ;;  %s1640_s15 = sphi %s1686_s15, %s2022_s15   ;;  %s1636_s14 = sphi %s1684_s14, %s2021_s14   ;;  %s1632_s13 = sphi %s1682_s13, %s2020_s13   ;;  %s1628_s12 = sphi %s1680_s12, %s2019_s12  }
   0x7   : > { %p28_p0 = scmp.ge.s32.totalorder %s27_s18, 2  ;;  %p70_p1 = scmp.ne.s32.totalorder %s1636_s14, %s1632_s13 }
   0x8   : > { %p71_p2 = scmp.eq.s32.totalorder %s1648_s17, 0  ;;  %p1262_p4 = scmp.lt.s32.totalorder %s1648_s17, 2 }
   0x9   : > { %s2025_s18 = smov (%p28_p0, %s27_s18), 0  ;;  %s166_s21 = sand.u32 1, %s1648_s17  }
   0xa   : > { %p72_p3 = por %p71_p2, %p70_p1  ;;  %s60_s20 = ssub.s32 %s1644_s16, %s2025_s18 }
   0xb   : > { %p61_p5 = scmp.eq.s32.totalorder %s60_s20, 0  ;;  %s168_s22 = sand.u32 1, %s1636_s14  }
   0xc   : > { %s1234_s23 = sshll.u32 %s1644_s16, 8  ;;  %s1116_s25 = sshll.u32 %s168_s22, 9 }
   0xd   : > { %s1724_s24 = scalar_select %p61_p5, %s1636_s14, %s63_s19  }
   0xe   : > { %s1731_s28 = scalar_lea.hbm %s1999_s1, %s1234_s23  ;;  %p1733_p6 = pnand %p1262_p4, %p72_p3 }
   0xf   : > { %s170_s30 = scalar_lea.vmem [#allocation6], %s1116_s25  ;;  %s1739_s5 = scalar_lea.sflag [#allocation7], %s166_s21 }
  0x10   : > { %s2008_s29 = scalar_select %p1733_p6, 1, 0 }
  0x11   : > { %s177_s4 = sshll.u32 %s170_s30, 4  ;;  %s1476_s6 = scalar_lea.hbm %s1731_s28, 8192  ;;  %s1737_s4 = int_to_ptr.vmem [resolvable:$true] %s177_s4 }
  0x12   : > { %p1477_p7 = scmp.ne.s32.totalorder %s1731_s28, %s1476_s6  ;;  %p2003_p8 = pneg %p1733_p6 }
  0x13   : > { %s1481_s9 = scalar_lea.hbm %s1999_s1, 16384  ;;  %p1482_p11 = scmp.lt.u32.totalorder %s1731_s28, %s1999_s1 }
  0x14   : > { %p1479_p9 = pnand %p2003_p8, %p1477_p7  ;;  %p1483_p12 = scmp.lt.u32.totalorder %s1481_s9, %s1476_s6 }
  0x15   : > { %p1485_p0 = scmp.lt.u32.totalorder %s1476_s6, %s1731_s28 }
  0x16   : > { %p1480_p10 = pneg %p1479_p9  ;;  %p1484_p13 = por %p1483_p12, %p1482_p11 }
  0x18   : > { %p1486_p1 = por %p1485_p0, %p1484_p13 }
  0x1a   : > { %p1487_p2 = pnand %p1486_p1, %p1480_p10 }
  0x1c   : > { %1490 = shalt.err (!%p1487_p2)
}
  0x1d   : > { %s1491_s19 = scalar_lea.vmem %s1737_s4, 8192  ;;  %s1650_s20 = smov [#allocation6]  }
  0x1e   : > { %p1492_p3 = scmp.ne.s32.totalorder %s1737_s4, %s1491_s19  ;;  %s1496_s21 = sshll.u32 %s1650_s20, 4  ;;  %s1497_s21 = int_to_ptr.vmem [resolvable:$false] %s1496_s21 }
  0x1f   : > { %s1498_s23 = scalar_lea.vmem %s1497_s21, 16384  ;;  %p1499_p7 = scmp.lt.s32.totalorder %s1737_s4, %s1497_s21 }
  0x20   : > { %p1494_p4 = pnand %p1492_p3, %p2003_p8  ;;  %p1500_p9 = scmp.lt.s32.totalorder %s1498_s23, %s1491_s19 }
  0x22   : > { %p1495_p5 = pneg %p1494_p4  ;;  %p1501_p11 = por %p1500_p9, %p1499_p7 }
  0x24   : > { %p1502_p12 = pnand %p1501_p11, %p1495_p5 }
  0x26   : > { %1505 = shalt.err (!%p1502_p12)
}
  0x27   : > { %s1651_s25 = smov 512   ;;  %s1652_s26 = smov 256  }
  0x28   : > { %s1653_s27 = smov 16   ;;  %s1768_s30 = sadd.s32 4294967295, %s1648_s17  }
  0x29   : > { %1257 = dma.hbm_to_vmem [thread:$0]  (!%p1733_p6), %s1731_s28, 8192, %s1737_s4, %s1739_s5, %s1651_s25, %s1652_s26, %s1653_s27  }
  0x2a   : > { %p76_p10 = scmp.ne.s32.totalorder %s1632_s13, %s1628_s12  ;;  %p2002_p13 = scmp.eq.s32.totalorder %s1768_s30, 0 }
  0x2b   : > { %p1113_p0 = scmp.ge.s32.totalorder %s1648_s17, 1  ;;  %p139_p1 = scmp.lt.s32.totalorder %s1648_s17, 3 }
  0x2c   : > { %p1777_p2 = por %p2002_p13, %p76_p10  ;;  %s1654_s28 = smov [#allocation3]  }
  0x2d   : > { %p1781_p3 = pnand %p1113_p0, %p139_p1  ;;  %s155_s4 = sshll.u32 %s1654_s28, 4  ;;  %s156_s4 = int_to_ptr.vmem [resolvable:$true] %s155_s4 }
  0x2e   : > { %s2009_s6 = scalar_select %p1777_p2, 1, 0 }
  0x2f   : > { %s2010_s7 = scalar_select %p1781_p3, 1, 0 }
  0x30   : > { %s1119_s8 = sshll.u32 %s168_s22, 8  ;;  %p1250_p4 = pneg %p1781_p3 }
  0x31   : > { %s1236_s12 = sshll.u32 %s1644_s16, 12  ;;  %s191_s9 = scalar_lea.vmem [#allocation8], %s1119_s8 }
  0x32   : > { %s199_s10 = sshll.u32 %s191_s9, 4  ;;  %p1792_p5 = pnand %p1250_p4, %p2002_p13  ;;  %s1801_s10 = int_to_ptr.vmem [resolvable:$true] %s199_s10 }
  0x33   : > { %s1799_s21 = scalar_lea.hbm %s2000_s2, %s1236_s12  ;;  %s1506_s25 = scalar_lea.hbm %s1998_s0, 128 }
  0x34   : > { %p1507_p7 = scmp.ne.s32.totalorder %s1998_s0, %s1506_s25  ;;  %p1508_p9 = pneg %p1792_p5 }
  0x35   : > { %p1513_p10 = scmp.lt.u32.totalorder %s1506_s25, %s1998_s0 }
  0x36   : > { %p1509_p11 = pnand %p1508_p9, %p1507_p7 }
  0x38   : > { %p1510_p12 = pneg %p1509_p11 }
  0x3a   : > { %p1515_p0 = pnand %p1513_p10, %p1510_p12 }
  0x3c   : > { %1518 = shalt.err (!%p1515_p0)
}
  0x3d   : > { %s1519_s12 = scalar_lea.vmem %s156_s4, 128  ;;  %p1527_p8 = scmp.lt.s32.totalorder %s156_s4, %s156_s4 }
  0x3e   : > { %p1520_p1 = scmp.ne.s32.totalorder %s156_s4, %s1519_s12  ;;  %p1528_p2 = scmp.lt.s32.totalorder %s1519_s12, %s1519_s12 }
  0x40   : > { %p1522_p4 = pnand %p1520_p1, %p1508_p9  ;;  %p1529_p3 = por %p1528_p2, %p1527_p8 }
  0x42   : > { %p1523_p13 = pneg %p1522_p4 }
  0x44   : > { %p1530_p6 = pnand %p1529_p3, %p1523_p13 }
  0x46   : > { %1533 = shalt.err (!%p1530_p6)
}
  0x47   : > { %1253 = dma.hbm_to_vmem [thread:$0]  (!%p1792_p5), %s1998_s0, 128, %s156_s4, [#allocation4]  }
  0x48   : > { %s1534_s20 = scalar_lea.hbm %s1799_s21, 4096  ;;  %p2012_p9 = scmp.ne.s32.totalorder %s2008_s29, 0 }
  0x49   : > { %p1535_p7 = scmp.ne.s32.totalorder %s1799_s21, %s1534_s20  ;;  %s1539_s25 = scalar_lea.hbm %s2000_s2, 8192 }
  0x4a   : > { %p2013_p11 = pneg %p2012_p9  ;;  %p1540_p6 = scmp.lt.u32.totalorder %s1799_s21, %s2000_s2 }
  0x4b   : > { %p1541_p8 = scmp.lt.u32.totalorder %s1539_s25, %s1534_s20  ;;  %p1543_p2 = scmp.lt.u32.totalorder %s1534_s20, %s1799_s21 }
  0x4c   : > { %p1537_p12 = pnand %p1535_p7, %p2013_p11 }
  0x4d   : > { %p1542_p13 = por %p1541_p8, %p1540_p6 }
  0x4e   : > { %p1538_p10 = pneg %p1537_p12 }
  0x4f   : > { %p1544_p3 = por %p1543_p2, %p1542_p13 }
  0x51   : > { %p1545_p0 = pnand %p1544_p3, %p1538_p10 }
  0x53   : > { %1548 = shalt.err (!%p1545_p0)
}
  0x54   : > { %s1549_s4 = scalar_lea.vmem %s1801_s10, 4096  ;;  %p2014_p1 = pmov %p2013_p11 }
  0x55   : > { %p1550_p5 = scmp.ne.s32.totalorder %s1801_s10, %s1549_s4  ;;  %s1655_s27 = smov [#allocation8]  }
  0x56   : > { %s1554_s28 = sshll.u32 %s1655_s27, 4  ;;  %s1555_s28 = int_to_ptr.vmem [resolvable:$false] %s1554_s28 }
  0x57   : > { %p1552_p4 = pnand %p1550_p5, %p2014_p1  ;;  %s1556_s8 = scalar_lea.vmem %s1555_s28, 8192 }
  0x58   : > { %p1557_p11 = scmp.lt.s32.totalorder %s1801_s10, %s1555_s28  ;;  %p1558_p12 = scmp.lt.s32.totalorder %s1556_s8, %s1549_s4 }
  0x59   : > { %p1553_p7 = pneg %p1552_p4 }
  0x5a   : > { %p1559_p6 = por %p1558_p12, %p1557_p11 }
  0x5c   : > { %p1560_p8 = pnand %p1559_p6, %p1553_p7 }
  0x5e   : > { %1563 = shalt.err (!%p1560_p8)
}
  0x5f   : > { %s1656_s12 = smov 128   ;;  %s1657_s9 = smov 8  }
  0x60   : > { %1260 = dma.hbm_to_vmem [thread:$0]  (!%p2012_p9), %s1799_s21, 4096, %s1801_s10, %s1739_s5, %s1656_s12, %s1656_s12, %s1657_s9  }
  0x61   : > { %p2015_p10 = scmp.ne.s32.totalorder %s2010_s7, 0 }
  0x62   : > { %p2016_p13 = scmp.eq.s32.totalorder (!%p2015_p10), %s1768_s30, 0 }
  0x63   : > { %211 = sbr.rel (%p2015_p10) target bundleno = 683 (0x2ab), region = 32 }
  0x6a   : > { %1615 = dma.done.wait (%p2016_p13), [#allocation4], 128   ;;  %p2017_p2 = pmov %p2016_p13 }
  0x6b   : > { %s217_s19 = sand.u32 1, %s1768_s30   ;;  %s219_s20 = sand.u32 1, %s1632_s13  }
  0x6c   : > { %1617 = vsyncadd (%p2017_p2), [#allocation4], 4294967168  ;;  %s1125_s23 = sshll.u32 %s219_s20, 9  ;;  %s218_s22 = scalar_lea.sflag [#allocation7], %s217_s19 }
  0x6d   : > { %s1851_s25 = scalar_lea.vmem [#allocation6], %s1125_s23  ;;  %p2018_p3 = scmp.ne.s32.totalorder %s2009_s6, 0 }
  0x6f   : > { %1619 = dma.done.wait (%p2018_p3), %s218_s22, 12288  }
  0x70   : > { %1621 = vsyncadd (%p2018_p3), %s218_s22, 4294955008  ;;  %s1126_s29 = sshll.u32 %s219_s20, 8  ;;  %p1127_p9 = scmp.ne.s32.totalorder %s1640_s15, 0 }
  0x71   : > { %s1857_s5 = scalar_lea.vmem [#allocation8], %s1126_s29  ;;  %v1658_v0 = vmov (!%p1127_p9), 0.0  }
  0x72   : > { %258 = sbr.rel (%p1127_p9) target bundleno = 121 (0x79), region = 48  ;;  %259 = vst [vmem:[#allocation2] sm:$0xff] (!%p1127_p9), %v1658_v0  ;;  %260 = vst [vmem:[#allocation2 + $0x8] sm:$0xff] (!%p1127_p9), %v1658_v0 }
  0x79 PF: > { %v1322_v1 = vld [vmem:[%s1851_s25 + $0x4] ss:$16 sps:$4 sm:$0xff]   ;;  %v1324_v2 = vld [vmem:[%s1851_s25] ss:$16 sps:$4 sm:$0xff]   ;;  %v1343_v8 = vld [vmem:[%s1851_s25 + $0xc] ss:$16 sps:$4 sm:$0xff]  }
  0x7a   : > { %653 = vmatprep.subr.bf16.mxu0 %v1322_v1  ;;  %v1325_v3 = vld [vmem:[%s1851_s25 + $0x24] ss:$16 sps:$4 sm:$0xff]   ;;  %v1327_v4 = vld [vmem:[%s1851_s25 + $0x20] ss:$16 sps:$4 sm:$0xff]   ;;  %v1345_v9 = vld [vmem:[%s1851_s25 + $0x8] ss:$16 sps:$4 sm:$0xff]   ;;  %694 = vmatprep.subr.bf16.mxu1 %v1343_v8 }
  0x7b   : > { %654 = vmatpush1.bf16.msra.mxu0 %v1324_v2  ;;  %v1328_v5 = vld [vmem:[%s1851_s25 + $0x44] ss:$16 sps:$4 sm:$0xff]   ;;  %v1330_v6 = vld [vmem:[%s1851_s25 + $0x40] ss:$16 sps:$4 sm:$0xff]   ;;  %v1349_v12 = vld [vmem:[%s1851_s25 + $0x2c] ss:$16 sps:$4 sm:$0xff]   ;;  %695 = vmatpush1.bf16.msra.mxu1 %v1345_v9 }
  0x7c   : > { %655 = vmatprep.subr.bf16.mxu0 %v1325_v3  ;;  %v1331_v7 = vld [vmem:[%s1851_s25 + $0x64] ss:$16 sps:$4 sm:$0xff]   ;;  %v1333_v10 = vld [vmem:[%s1851_s25 + $0x60] ss:$16 sps:$4 sm:$0xff]   ;;  %v1351_v13 = vld [vmem:[%s1851_s25 + $0x28] ss:$16 sps:$4 sm:$0xff]   ;;  %696 = vmatprep.subr.bf16.mxu1 %v1349_v12 }
  0x7d   : > { %v1334_v11 = vld [vmem:[%s1851_s25 + $0x84] ss:$16 sps:$4 sm:$0xff]   ;;  %v1336_v14 = vld [vmem:[%s1851_s25 + $0x80] ss:$16 sps:$4 sm:$0xff]   ;;  %v1355_v15 = vld [vmem:[%s1851_s25 + $0x4c] ss:$16 sps:$4 sm:$0xff]  }
  0x7e   : > { %v1337_v16 = vld [vmem:[%s1851_s25 + $0xa4] ss:$16 sps:$4 sm:$0xff]   ;;  %v1357_v17 = vld [vmem:[%s1851_s25 + $0x48] ss:$16 sps:$4 sm:$0xff]   ;;  %v1361_v18 = vld [vmem:[%s1851_s25 + $0x6c] ss:$16 sps:$4 sm:$0xff]  }
  0x7f   : > { %656 = vmatpush1.bf16.msra.mxu0 %v1327_v4  ;;  %697 = vmatpush1.bf16.msra.mxu1 %v1351_v13  ;;  %v1339_v19 = vld [vmem:[%s1851_s25 + $0xa0] ss:$16 sps:$4 sm:$0xff]   ;;  %v1340_v20 = vld [vmem:[%s1851_s25 + $0xc4] ss:$16 sps:$4 sm:$0xff]   ;;  %v1363_v21 = vld [vmem:[%s1851_s25 + $0x68] ss:$16 sps:$4 sm:$0xff]  }
  0x80   : > { %657 = vmatprep.subr.bf16.mxu0 %v1328_v5  ;;  %698 = vmatprep.subr.bf16.mxu1 %v1355_v15  ;;  %v1367_v22 = vld [vmem:[%s1851_s25 + $0x8c] ss:$16 sps:$4 sm:$0xff]   ;;  %v1342_v23 = vld [vmem:[%s1851_s25 + $0xc0] ss:$16 sps:$4 sm:$0xff]   ;;  %v1346_v24 = vld [vmem:[%s1851_s25 + $0xe4] ss:$16 sps:$4 sm:$0xff]  }
  0x81   : > { %v1369_v25 = vld [vmem:[%s1851_s25 + $0x88] ss:$16 sps:$4 sm:$0xff]   ;;  %v1373_v26 = vld [vmem:[%s1851_s25 + $0xac] ss:$16 sps:$4 sm:$0xff]   ;;  %v1348_v27 = vld [vmem:[%s1851_s25 + $0xe0] ss:$16 sps:$4 sm:$0xff]  }
  0x82   : > { %v1352_v28 = vld [vmem:[%s1851_s25 + $0x104] ss:$16 sps:$4 sm:$0xff]   ;;  %v1375_v29 = vld [vmem:[%s1851_s25 + $0xa8] ss:$16 sps:$4 sm:$0xff]   ;;  %v1379_v30 = vld [vmem:[%s1851_s25 + $0xcc] ss:$16 sps:$4 sm:$0xff]  }
  0x83   : > { %658 = vmatpush1.bf16.msra.mxu0 %v1330_v6  ;;  %699 = vmatpush1.bf16.msra.mxu1 %v1357_v17  ;;  %v1354_v31 = vld [vmem:[%s1851_s25 + $0x100] ss:$16 sps:$4 sm:$0xff]   ;;  %v1358_v32 = vld [vmem:[%s1851_s25 + $0x124] ss:$16 sps:$4 sm:$0xff]   ;;  %v1381_v33 = vld [vmem:[%s1851_s25 + $0xc8] ss:$16 sps:$4 sm:$0xff]  }
  0x84   : > { %659 = vmatprep.subr.bf16.mxu0 %v1331_v7  ;;  %700 = vmatprep.subr.bf16.mxu1 %v1361_v18  ;;  %v1385_v34 = vld [vmem:[%s1851_s25 + $0xec] ss:$16 sps:$4 sm:$0xff]   ;;  %v1360_v36 = vld [vmem:[%s1851_s25 + $0x120] ss:$16 sps:$4 sm:$0xff]   ;;  %v1364_v38 = vld [vmem:[%s1851_s25 + $0x144] ss:$16 sps:$4 sm:$0xff]  }
  0x85   : > { %v261_v35 = vld [vmem:[#allocation3] sm:$0xff]  ;;  %v1366_v41 = vld [vmem:[%s1851_s25 + $0x140] ss:$16 sps:$4 sm:$0xff]   ;;  %v1370_v42 = vld [vmem:[%s1851_s25 + $0x164] ss:$16 sps:$4 sm:$0xff]   ;;  %p1228_p0 = scmp.ne.s32.totalorder %s1640_s15, 1 }
  0x86   : > { %v1129_v37 = vcombine.high %v261_v35, %v261_v35  ;;  %v1387_v39 = vld [vmem:[%s1851_s25 + $0xe8] ss:$16 sps:$4 sm:$0xff]   ;;  %v1391_v40 = vld [vmem:[%s1851_s25 + $0x10c] ss:$16 sps:$4 sm:$0xff]   ;;  %v1372_v45 = vld [vmem:[%s1851_s25 + $0x160] ss:$16 sps:$4 sm:$0xff]   ;;  %v1128_v0 = vcombine.low %v261_v35, %v261_v35 }
  0x87   : > { %660 = vmatpush1.bf16.msra.mxu0 %v1333_v10  ;;  %701 = vmatpush1.bf16.msra.mxu1 %v1363_v21  ;;  %v1393_v43 = vld [vmem:[%s1851_s25 + $0x108] ss:$16 sps:$4 sm:$0xff]   ;;  %v1397_v44 = vld [vmem:[%s1851_s25 + $0x12c] ss:$16 sps:$4 sm:$0xff]   ;;  %v1376_v46 = vld [vmem:[%s1851_s25 + $0x184] ss:$16 sps:$4 sm:$0xff]  }
  0x88   : > { %661 = vmatprep.subr.bf16.mxu0 %v1334_v11  ;;  %702 = vmatprep.subr.bf16.mxu1 %v1367_v22  ;;  %v1399_v47 = vld [vmem:[%s1851_s25 + $0x128] ss:$16 sps:$4 sm:$0xff]   ;;  %v1402_v48 = vld [vmem:[%s1851_s25 + $0x14c] ss:$16 sps:$4 sm:$0xff]   ;;  %v1378_v49 = vld [vmem:[%s1851_s25 + $0x180] ss:$16 sps:$4 sm:$0xff]  }
  0x89   : > { %685 = vmatprep.mubr.bf16.mxu0 %v1129_v37  ;;  %726 = vmatprep.mubr.bf16.mxu1 %v1129_v37  ;;  %v1382_v50 = vld [vmem:[%s1851_s25 + $0x1a4] ss:$16 sps:$4 sm:$0xff]   ;;  %v1404_v51 = vld [vmem:[%s1851_s25 + $0x148] ss:$16 sps:$4 sm:$0xff]   ;;  %v1405_v52 = vld [vmem:[%s1851_s25 + $0x16c] ss:$16 sps:$4 sm:$0xff]  }
  0x8a   : > { %v1384_v53 = vld [vmem:[%s1851_s25 + $0x1a0] ss:$16 sps:$4 sm:$0xff]   ;;  %v1388_v54 = vld [vmem:[%s1851_s25 + $0x1c4] ss:$16 sps:$4 sm:$0xff]   ;;  %v1407_v56 = vld [vmem:[%s1851_s25 + $0x168] ss:$16 sps:$4 sm:$0xff]  }
  0x8b   : > { %662 = vmatpush1.bf16.msra.mxu0 %v1336_v14  ;;  %703 = vmatpush1.bf16.msra.mxu1 %v1369_v25  ;;  %v1390_v55 = vld [vmem:[%s1851_s25 + $0x1c0] ss:$16 sps:$4 sm:$0xff]   ;;  %v1408_v57 = vld [vmem:[%s1851_s25 + $0x18c] ss:$16 sps:$4 sm:$0xff]   ;;  %v1394_v58 = vld [vmem:[%s1851_s25 + $0x1e4] ss:$16 sps:$4 sm:$0xff]  }
  0x8c   : > { %663 = vmatprep.subr.bf16.mxu0 %v1337_v16  ;;  %704 = vmatprep.subr.bf16.mxu1 %v1373_v26  ;;  %v1410_v59 = vld [vmem:[%s1851_s25 + $0x188] ss:$16 sps:$4 sm:$0xff]   ;;  %v1411_v60 = vld [vmem:[%s1851_s25 + $0x1ac] ss:$16 sps:$4 sm:$0xff]   ;;  %v1396_v61 = vld [vmem:[%s1851_s25 + $0x1e0] ss:$16 sps:$4 sm:$0xff]  }
  0x8d   : > { %v1422_v62 = vld [vmem:[%s1857_s5 + $0x4] ss:$8 sps:$4 sm:$0xff]   ;;  %v1413_v63 = vld [vmem:[%s1851_s25 + $0x1a8] ss:$16 sps:$4 sm:$0xff]   ;;  %v1425_v3 = vld [vmem:[%s1857_s5 + $0x14] ss:$8 sps:$4 sm:$0xff]  }
  0x8e   : > { %v1414_v1 = vld [vmem:[%s1851_s25 + $0x1cc] ss:$16 sps:$4 sm:$0xff]   ;;  %v1420_v2 = vld [vmem:[%s1857_s5] ss:$8 sps:$4 sm:$0xff]   ;;  %v1423_v6 = vld [vmem:[%s1857_s5 + $0x10] ss:$8 sps:$4 sm:$0xff]  }
  0x8f   : > { %664 = vmatpush1.bf16.msra.mxu0 %v1339_v19  ;;  %705 = vmatpush1.bf16.msra.mxu1 %v1375_v29  ;;  %v1416_v4 = vld [vmem:[%s1851_s25 + $0x1c8] ss:$16 sps:$4 sm:$0xff]   ;;  %v1417_v5 = vld [vmem:[%s1851_s25 + $0x1ec] ss:$16 sps:$4 sm:$0xff]  }
  0x90   : > { %665 = vmatprep.subr.bf16.mxu0 %v1340_v20  ;;  %706 = vmatprep.subr.bf16.mxu1 %v1379_v30  ;;  %v1428_v7 = vld [vmem:[%s1857_s5 + $0x24] ss:$8 sps:$4 sm:$0xff]   ;;  %v1419_v8 = vld [vmem:[%s1851_s25 + $0x1e8] ss:$16 sps:$4 sm:$0xff]   ;;  %v1431_v10 = vld [vmem:[%s1857_s5 + $0x34] ss:$8 sps:$4 sm:$0xff]  }
  0x91   : > { %v1426_v9 = vld [vmem:[%s1857_s5 + $0x20] ss:$8 sps:$4 sm:$0xff]   ;;  %v1429_v11 = vld [vmem:[%s1857_s5 + $0x30] ss:$8 sps:$4 sm:$0xff]   ;;  %v1434_v12 = vld [vmem:[%s1857_s5 + $0x44] ss:$8 sps:$4 sm:$0xff]  }
  0x92   : > { %v1432_v13 = vld [vmem:[%s1857_s5 + $0x40] ss:$8 sps:$4 sm:$0xff]   ;;  %v1437_v14 = vld [vmem:[%s1857_s5 + $0x54] ss:$8 sps:$4 sm:$0xff]   ;;  %v1435_v15 = vld [vmem:[%s1857_s5 + $0x50] ss:$8 sps:$4 sm:$0xff]  }
  0x93   : > { %666 = vmatpush1.bf16.msra.mxu0 %v1342_v23  ;;  %707 = vmatpush1.bf16.msra.mxu1 %v1381_v33  ;;  %v1440_v16 = vld [vmem:[%s1857_s5 + $0x64] ss:$8 sps:$4 sm:$0xff]   ;;  %v1438_v17 = vld [vmem:[%s1857_s5 + $0x60] ss:$8 sps:$4 sm:$0xff]   ;;  %v1443_v18 = vld [vmem:[%s1857_s5 + $0x74] ss:$8 sps:$4 sm:$0xff]  }
  0x94   : > { %667 = vmatprep.subr.bf16.mxu0 %v1346_v24  ;;  %708 = vmatprep.subr.bf16.mxu1 %v1385_v34  ;;  %v1441_v19 = vld [vmem:[%s1857_s5 + $0x70] ss:$8 sps:$4 sm:$0xff]   ;;  %v1446_v20 = vld [vmem:[%s1857_s5 + $0x84] ss:$8 sps:$4 sm:$0xff]   ;;  %v1444_v21 = vld [vmem:[%s1857_s5 + $0x80] ss:$8 sps:$4 sm:$0xff]  }
  0x95   : > { %v1449_v22 = vld [vmem:[%s1857_s5 + $0x94] ss:$8 sps:$4 sm:$0xff]   ;;  %v1447_v23 = vld [vmem:[%s1857_s5 + $0x90] ss:$8 sps:$4 sm:$0xff]   ;;  %v1452_v24 = vld [vmem:[%s1857_s5 + $0xa4] ss:$8 sps:$4 sm:$0xff]  }
  0x96   : > { %v1450_v25 = vld [vmem:[%s1857_s5 + $0xa0] ss:$8 sps:$4 sm:$0xff]   ;;  %v1455_v26 = vld [vmem:[%s1857_s5 + $0xb4] ss:$8 sps:$4 sm:$0xff]   ;;  %v1465_v35 = vld [vmem:[%s1857_s5 + $0xf0] ss:$8 sps:$4 sm:$0xff]  }
  0x97   : > { %668 = vmatpush1.bf16.msra.mxu0 %v1348_v27  ;;  %709 = vmatpush1.bf16.msra.mxu1 %v1387_v39  ;;  %v1453_v27 = vld [vmem:[%s1857_s5 + $0xb0] ss:$8 sps:$4 sm:$0xff]   ;;  %v1456_v29 = vld [vmem:[%s1857_s5 + $0xc0] ss:$8 sps:$4 sm:$0xff]   ;;  %v1461_v30 = vld [vmem:[%s1857_s5 + $0xd4] ss:$8 sps:$4 sm:$0xff]  }
  0x98   : > { %669 = vmatprep.subr.bf16.mxu0 %v1352_v28  ;;  %710 = vmatprep.subr.bf16.mxu1 %v1391_v40  ;;  %v1458_v28 = vld [vmem:[%s1857_s5 + $0xc4] ss:$8 sps:$4 sm:$0xff]   ;;  %v1462_v33 = vld [vmem:[%s1857_s5 + $0xe0] ss:$8 sps:$4 sm:$0xff]   ;;  %v1467_v34 = vld [vmem:[%s1857_s5 + $0xf4] ss:$8 sps:$4 sm:$0xff]  }
  0x9b   : > { %670 = vmatpush1.bf16.msra.mxu0 %v1354_v31  ;;  %711 = vmatpush1.bf16.msra.mxu1 %v1393_v43  ;;  %v1459_v31 = vld [vmem:[%s1857_s5 + $0xd0] ss:$8 sps:$4 sm:$0xff]  }
  0x9c   : > { %671 = vmatprep.subr.bf16.mxu0 %v1358_v32  ;;  %712 = vmatprep.subr.bf16.mxu1 %v1397_v44  ;;  %v1464_v32 = vld [vmem:[%s1857_s5 + $0xe4] ss:$8 sps:$4 sm:$0xff]  }
  0x9f   : > { %672 = vmatpush1.bf16.msra.mxu0 %v1360_v36  ;;  %713 = vmatpush1.bf16.msra.mxu1 %v1399_v47 }
  0xa0   : > { %673 = vmatprep.subr.bf16.mxu0 %v1364_v38  ;;  %714 = vmatprep.subr.bf16.mxu1 %v1402_v48 }
  0xa3   : > { %674 = vmatpush1.bf16.msra.mxu0 %v1366_v41  ;;  %715 = vmatpush1.bf16.msra.mxu1 %v1404_v51 }
  0xa4   : > { %675 = vmatprep.subr.bf16.mxu0 %v1370_v42  ;;  %716 = vmatprep.subr.bf16.mxu1 %v1405_v52 }
  0xa7   : > { %676 = vmatpush1.bf16.msra.mxu0 %v1372_v45  ;;  %717 = vmatpush1.bf16.msra.mxu1 %v1407_v56 }
  0xa8   : > { %677 = vmatprep.subr.bf16.mxu0 %v1376_v46  ;;  %718 = vmatprep.subr.bf16.mxu1 %v1408_v57 }
  0xab   : > { %678 = vmatpush1.bf16.msra.mxu0 %v1378_v49  ;;  %719 = vmatpush1.bf16.msra.mxu1 %v1410_v59  ;;  %v752_v59 = vld [vmem:[#allocation2 + $0x8] sm:$0xff] }
  0xac   : > { %679 = vmatprep.subr.bf16.mxu0 %v1382_v50  ;;  %720 = vmatprep.subr.bf16.mxu1 %v1411_v60 }
  0xaf   : > { %680 = vmatpush1.bf16.msra.mxu0 %v1384_v53  ;;  %721 = vmatpush1.bf16.msra.mxu1 %v1413_v63 }
  0xb0   : > { %681 = vmatprep.subr.bf16.mxu0 %v1388_v54  ;;  %722 = vmatprep.subr.bf16.mxu1 %v1414_v1 }
  0xb3   : > { %682 = vmatpush1.bf16.msra.mxu0 %v1390_v55  ;;  %723 = vmatpush1.bf16.msra.mxu1 %v1416_v4 }
  0xb4   : > { %683 = vmatprep.subr.bf16.mxu0 %v1394_v58  ;;  %724 = vmatprep.subr.bf16.mxu1 %v1417_v5  ;;  %v751_v58 = vld [vmem:[#allocation2] sm:$0xff] }
  0xb7   : > { %684 = vmatpush1.bf16.msra.mxu0 %v1396_v61  ;;  %725 = vmatpush1.bf16.msra.mxu1 %v1419_v8 }
  0xb8   : > { %947 = vmatprep.subr.bf16.mxu0 %v1422_v62 }
  0xba   : > { %686 = vmatmul.mubr.bf16.vlgmr.msra.gmra.mrb[0].mxu0 %v1128_v0  ;;  %727 = vmatmul.mubr.bf16.vlgmr.msra.gmra.mrb[0].mxu1 %v1128_v0 }
  0xbb   : > { %948 = vmatpush1.bf16.msra.mxu0 %v1420_v2 }
  0xbc   : > { %949 = vmatprep.subr.bf16.mxu0 %v1425_v3 }
  0xbf   : > { %950 = vmatpush1.bf16.msra.mxu0 %v1423_v6 }
  0xc0   : > { %951 = vmatprep.subr.bf16.mxu0 %v1428_v7 }
  0xc3   : > { %952 = vmatpush1.bf16.msra.mxu0 %v1426_v9 }
  0xc4   : > { %953 = vmatprep.subr.bf16.mxu0 %v1431_v10 }
  0xc7   : > { %954 = vmatpush1.bf16.msra.mxu0 %v1429_v11 }
  0xc8   : > { %955 = vmatprep.subr.bf16.mxu0 %v1434_v12 }
  0xcb   : > { %956 = vmatpush1.bf16.msra.mxu0 %v1432_v13 }
  0xcc   : > { %957 = vmatprep.subr.bf16.mxu0 %v1437_v14 }
  0xcf   : > { %958 = vmatpush1.bf16.msra.mxu0 %v1435_v15 }
  0xd0   : > { %959 = vmatprep.subr.bf16.mxu0 %v1440_v16 }
  0xd3   : > { %960 = vmatpush1.bf16.msra.mxu0 %v1438_v17 }
  0xd4   : > { %961 = vmatprep.subr.bf16.mxu0 %v1443_v18 }
  0xd7   : > { %962 = vmatpush1.bf16.msra.mxu0 %v1441_v19 }
  0xd8   : > { %963 = vmatprep.subr.bf16.mxu0 %v1446_v20 }
  0xdb   : > { %964 = vmatpush1.bf16.msra.mxu0 %v1444_v21 }
  0xdc   : > { %965 = vmatprep.subr.bf16.mxu0 %v1449_v22 }
  0xdf   : > { %966 = vmatpush1.bf16.msra.mxu0 %v1447_v23 }
  0xe0   : > { %967 = vmatprep.subr.bf16.mxu0 %v1452_v24 }
  0xe3   : > { %968 = vmatpush1.bf16.msra.mxu0 %v1450_v25 }
  0xe4   : > { %969 = vmatprep.subr.bf16.mxu0 %v1455_v26 }
  0xe7   : > { %970 = vmatpush1.bf16.msra.mxu0 %v1453_v27 }
  0xe8   : > { %971 = vmatprep.subr.bf16.mxu0 %v1458_v28 }
  0xeb   : > { %972 = vmatpush1.bf16.msra.mxu0 %v1456_v29 }
  0xec   : > { %973 = vmatprep.subr.bf16.mxu0 %v1461_v30 }
  0xef   : > { %974 = vmatpush1.bf16.msra.mxu0 %v1459_v31 }
  0xf0   : > { %975 = vmatprep.subr.bf16.mxu0 %v1464_v32 }
  0xf3   : > { %976 = vmatpush1.bf16.msra.mxu0 %v1462_v33 }
  0xf4   : > { %977 = vmatprep.subr.bf16.mxu0 %v1467_v34 }
  0xf7   : > { %978 = vmatpush1.bf16.msra.mxu0 %v1465_v35 }
 0x18d   : > { %v687_v36 = vpop.f32.mrb[0].mxu0  ;;  %v728_v42 = vpop.f32.mrb[0].mxu1 }
 0x18e   : > { %v1194_v37 = vmul.f32 -1.442695, %v687_v36  ;;  %v689_v38 = vpop.f32.mrb[1].mxu0  ;;  %v730_v43 = vpop.f32.mrb[1].mxu1 }
 0x18f   : > { %v1195_v39 = vmul.f32 -1.442695, %v689_v38  ;;  %v691_v40 = vpop.f32.mrb[2].mxu0  ;;  %v732_v44 = vpop.f32.mrb[2].mxu1 }
 0x190   : > { %1468 = vpow2.f32 %v1194_v37  ;;  %v692_v41 = vpop.f32.mrb[3].mxu0  ;;  %v733_v46 = vpop.f32.mrb[3].mxu1 }
 0x191   : > { %1470 = vpow2.f32 %v1195_v39 }
 0x19a   : > { %v1469_v45 = vpop.eup %1468 }
 0x19b   : > { %v1471_v47 = vpop.eup %1470  ;;  %v741_v48 = vadd.f32 1.0, %v1469_v45 }
 0x19c   : > { %v742_v49 = vadd.f32 1.0, %v1471_v47 }
 0x19d   : > { %1472 = vrcp.f32 %v741_v48 }
 0x19e   : > { %1474 = vrcp.f32 %v742_v49 }
 0x1a7   : > { %v1473_v50 = vpop.eup %1472 }
 0x1a8   : > { %v1475_v51 = vpop.eup %1474  ;;  %v747_v52 = vmul.f32 %v1473_v50, %v687_v36 }
 0x1a9   : > { %v748_v53 = vmul.f32 %v1475_v51, %v689_v38 }
 0x1aa   : > { %v749_v54 = vmul.f32 %v747_v52, %v728_v42 }
 0x1ab   : > { %v750_v55 = vmul.f32 %v748_v53, %v730_v43 }
 0x1ac   : > { %v753_v57 = vpack.c.bf16 %v749_v54, %v749_v54 }
 0x1ad   : > { %v754_v56 = vpack.c.bf16 %v750_v55, %v750_v55 }
 0x1af   : > { %979 = vmatprep.mubr.bf16.mxu0 %v754_v56 }
 0x1b0   : > { %980 = vmatmul.mubr.bf16.vlgmr.msra.gmra.mrb[4].mxu0 %v753_v57 }
 0x281   : > { %995 = sbr.rel (%p1228_p0) target bundleno = 658 (0x292), region = 52 }
 0x283   : > { %v981_v60 = vpop.f32.mrb[4].mxu0 }
 0x284   : > { %v988_v61 = vadd.f32 %v981_v60, %v751_v58  ;;  %v983_v62 = vpop.f32.mrb[5].mxu0 }
 0x285   : > { %v989_v63 = vadd.f32 %v983_v62, %v752_v59  ;;  %v985_v0 = vpop.f32.mrb[6].mxu0 }
 0x286   : > { %990 = vst [vmem:[#allocation2] sm:$0xff] %v988_v61  ;;  %v986_v1 = vpop.f32.mrb[7].mxu0 }
 0x287   : > { %991 = vst [vmem:[#allocation2 + $0x8] sm:$0xff] %v989_v63 }
 0x28d   : > { %v996_v2 = vld [vmem:[#allocation2] sm:$0xff] }
 0x28e   : > { %v997_v3 = vld [vmem:[#allocation2 + $0x8] sm:$0xff] }
 0x28f   : > { %v1237_v4 = vpack.c.bf16 %v997_v3, %v996_v2 }
 0x291   : > { %1006 = vst [vmem:[#allocation9] sm:$0xff] %v1237_v4 }
 0x292 PF: > { %p1264_p5 = scmp.eq.s32.totalorder %s1768_s30, 1  ;;  %s1659_s6 = smov [#allocation9]  }
 0x293   : > { %s1017_s7 = sshll.u32 %s1659_s6, 4  ;;  %s1018_s7 = int_to_ptr.vmem [resolvable:$true] %s1017_s7 }
 0x294   : > { %s1564_s10 = scalar_lea.vmem %s1018_s7, 128  ;;  %p1571_p11 = scmp.lt.s32.totalorder %s1018_s7, %s1018_s7 }
 0x295   : > { %p1565_p1 = scmp.ne.s32.totalorder %s1018_s7, %s1564_s10  ;;  %p1572_p12 = scmp.lt.s32.totalorder %s1564_s10, %s1564_s10 }
 0x297   : > { %p1566_p4 = pnand %p1565_p1, %p1264_p5  ;;  %p1573_p6 = por %p1572_p12, %p1571_p11 }
 0x299   : > { %p1567_p7 = pneg %p1566_p4 }
 0x29b   : > { %p1574_p8 = pnand %p1573_p6, %p1567_p7 }
 0x29d   : > { %1577 = shalt.err (!%p1574_p8)
}
 0x29e   : > { %s1578_s11 = scalar_lea.hbm %s2001_s3, 128 }
 0x29f   : > { %p1579_p10 = scmp.ne.s32.totalorder %s2001_s3, %s1578_s11  ;;  %p1584_p3 = scmp.lt.u32.totalorder %s1578_s11, %s2001_s3 }
 0x2a1   : > { %p1580_p13 = pnand %p1579_p10, %p1264_p5 }
 0x2a3   : > { %p1581_p2 = pneg %p1580_p13 }
 0x2a5   : > { %p1586_p9 = pnand %p1584_p3, %p1581_p2 }
 0x2a7   : > { %1589 = shalt.err (!%p1586_p9)
}
 0x2a8   : > { %1247 = dma.vmem_to_hbm [thread:$0]  (%p1264_p5), %s1018_s7, 128, %s2001_s3, [#allocation5]  }
 0x2a9   : > { %1623 = dma.done.wait (%p1264_p5), [#allocation5], 128  }
 0x2aa   : > { %1625 = vsyncadd (%p1264_p5), [#allocation5], 4294967168 }
 0x2ab PF: > { %s18_s17 = sadd.s32 1, %s1648_s17   ;;  %s2019_s12 = smov %s1632_s13 }
 0x2ac   : > { %p15_p0 = scmp.ge.s32.totalorder %s18_s17, 4   ;;  %s2020_s13 = smov %s1636_s14 }
 0x2ad   : > { %s2021_s14 = smov %s1724_s24  ;;  %s2022_s15 = smov %s1644_s16 }
 0x2ae   : > { %s2023_s16 = smov %s2025_s18  ;;  %17 = sbr.rel (!%p15_p0) target bundleno = 6 (0x6), region = 95 }
 0x2b5   :  { %1030 = vsyncpa [#allocation4], 1 }
 0x2b6   :  { %1032 = vsyncpa [#allocation4 + $0x1], 1 }
 0x2b7   :  { %1033 = vsyncpa [#allocation7], 1 }
 0x2b8   :  { %1035 = vsyncpa [#allocation7 + $0x1], 1 }
 0x2b9   :  { %1036 = vsyncpa [#allocation5], 1 }
 0x2ba   :  { %1038 = vsyncpa [#allocation5 + $0x1], 1 }

</bundles_post_ra>
